<compile_context>
chip_gen: v6e
topology: v6e:2x2x1
jax: 0.10.0
libtpu: 0.0.40
codegen_flags: <defaults>
</compile_context>

<pallas_src>
import jax
import jax.numpy as jnp
from jax import lax
from jax.experimental import pallas as pl
from jax.experimental.pallas import tpu as pltpu

VOCAB = 100
EMB = 10
OUT = 1
LANES = 128        # lane width (fast axis)
MAX_TILE_R = 16    # sublane rows per grid step (multiple of 8) -> 2048 tokens/step


def fused_embed_kernel(ids_ref, v_ref, out_ref):
    # ids_ref: (tile_r, 128) int32  token ids, sublane+lane dense
    # v_ref:   (VOCAB,)      float32 in SMEM, v[k] = table[k] @ W^T + b
    # out_ref: (tile_r, 128) float32 full-block (unmasked) store
    ids = ids_ref[...]
    acc = jnp.zeros(ids.shape, jnp.float32)
    # Gather-free lookup: VOCAB fused compare+selects on the VPU.  A static
    # Python loop keeps every compare against an immediate and every v_ref[k]
    # a static SMEM scalar load; ids matching no k (out-of-range) stay 0.0.
    for k in range(VOCAB):
        acc = jnp.where(ids == k, v_ref[k], acc)
    out_ref[...] = acc


def model_emb(x_ids, table, w, b, *, max_tile_r=MAX_TILE_R):
    """x_ids: (B, S) int token ids. table: (100, 10). w: (1, 10). b: (1,).
    Returns (B, S, 1) float32, matching Linear(Embedding(x))."""
    B, S = x_ids.shape
    N = B * S

    # --- one-time algebraic fusion (wrapper side, not per-token work) ---
    # v[k] = table[k, :] @ W^T + b   -> (VOCAB,)
    fused = (jnp.dot(table.astype(jnp.float32), w.astype(jnp.float32).T,
                     precision=lax.Precision.HIGHEST)
             + b.astype(jnp.float32)[None, :]).reshape(VOCAB)

    # --- ids laid out sublane+lane dense as (rows, 128), rows padded to tile_r ---
    n_rows = -(-N // LANES)
    tile_r = min(max_tile_r, -(-n_rows // 8) * 8)      # multiple of 8, >= 8
    n_rows_pad = -(-n_rows // tile_r) * tile_r
    ids_flat = x_ids.reshape(-1).astype(jnp.int32)
    ids_pad = jnp.pad(ids_flat, (0, n_rows_pad * LANES - N)).reshape(
        n_rows_pad, LANES)

    out = pl.pallas_call(
        fused_embed_kernel,
        out_shape=jax.ShapeDtypeStruct((n_rows_pad, LANES), jnp.float32),
        grid=(n_rows_pad // tile_r,),
        in_specs=[
            pl.BlockSpec((tile_r, LANES), lambda i: (i, 0)),      # ids block
            pl.BlockSpec(memory_space=pltpu.MemorySpace.SMEM),    # fused vector
        ],
        out_specs=pl.BlockSpec((tile_r, LANES), lambda i: (i, 0)),
        compiler_params=pltpu.CompilerParams(
            dimension_semantics=("parallel",)),
    )(ids_pad, fused)

    return out.reshape(-1)[:N].reshape(B, S, OUT)


if __name__ == "__main__":
    key = jax.random.PRNGKey(0)
    k_ids, k_tab, k_w, k_b = jax.random.split(key, 4)

    # Small shapes implied by the module: batch=2, seq=8, ids in [0, 100).
    B, S = 2, 8
    x = jax.random.randint(k_ids, (B, S), 0, VOCAB, dtype=jnp.int32)

    # Deterministic synthetic params mirroring nn.Embedding(100,10), nn.Linear(10,1).
    table = jax.random.normal(k_tab, (VOCAB, EMB), dtype=jnp.float32)
    w = jax.random.normal(k_w, (OUT, EMB), dtype=jnp.float32) * 0.1
    b = jax.random.normal(k_b, (OUT,), dtype=jnp.float32) * 0.1

    y = model_emb(x, table, w, b)
    y = jax.block_until_ready(y)

    # Pure-JAX reference: Linear(Embedding(x)) at HIGHEST precision.
    ref = jnp.einsum("bse,oe->bso", table[x], w,
                     precision=lax.Precision.HIGHEST) + b      # (B, S, 1)
    assert y.shape == (B, S, OUT)
    assert jnp.allclose(y, ref, atol=1e-5, rtol=1e-5)

    print("KERNEL_OK")
</pallas_src>

<mosaic_0001>
module attributes {stable_mosaic.version = 11 : i64} {
  func.func @fused_embed_kernel(%arg0: i32, %arg1: memref<8x128xi32, #tpu.memory_space<vmem>>, %arg2: memref<100xf32, #tpu.memory_space<smem>>, %arg3: memref<8x128xf32, #tpu.memory_space<vmem>>) attributes {dimension_semantics = [#tpu.dimension_semantics<parallel>], iteration_bounds = array<i64: 1>, scalar_prefetch = 0 : i64, scratch_operands = 0 : i64, tpu.core_type = #tpu.core_type<tc>, window_params = [{transform_indices = @transform_0, window_bounds = array<i64: 8, 128>}, {transform_indices = @transform_1, window_bounds = array<i64: 100>}, {transform_indices = @transform_2, window_bounds = array<i64: 8, 128>}]} {
    %c0 = arith.constant 0 : index
    %c0_0 = arith.constant 0 : index
    %0 = vector.load %arg1[%c0, %c0_0] : memref<8x128xi32, #tpu.memory_space<vmem>>, vector<8x128xi32>
    %cst = arith.constant 0.000000e+00 : f32
    %1 = vector.broadcast %cst : f32 to vector<8x128xf32>
    %c0_i32 = arith.constant 0 : i32
    %2 = vector.broadcast %c0_i32 : i32 to vector<8x128xi32>
    %3 = arith.cmpi eq, %0, %2 : vector<8x128xi32>
    %c0_1 = arith.constant 0 : index
    %4 = memref.load %arg2[%c0_1] : memref<100xf32, #tpu.memory_space<smem>>
    %5 = vector.broadcast %4 : f32 to vector<8x128xf32>
    %6 = arith.select %3, %5, %1 : vector<8x128xi1>, vector<8x128xf32>
    %c1_i32 = arith.constant 1 : i32
    %7 = vector.broadcast %c1_i32 : i32 to vector<8x128xi32>
    %8 = arith.cmpi eq, %0, %7 : vector<8x128xi32>
    %c1 = arith.constant 1 : index
    %9 = memref.load %arg2[%c1] : memref<100xf32, #tpu.memory_space<smem>>
    %10 = vector.broadcast %9 : f32 to vector<8x128xf32>
    %11 = arith.select %8, %10, %6 : vector<8x128xi1>, vector<8x128xf32>
    %c2_i32 = arith.constant 2 : i32
    %12 = vector.broadcast %c2_i32 : i32 to vector<8x128xi32>
    %13 = arith.cmpi eq, %0, %12 : vector<8x128xi32>
    %c2 = arith.constant 2 : index
    %14 = memref.load %arg2[%c2] : memref<100xf32, #tpu.memory_space<smem>>
    %15 = vector.broadcast %14 : f32 to vector<8x128xf32>
    %16 = arith.select %13, %15, %11 : vector<8x128xi1>, vector<8x128xf32>
    %c3_i32 = arith.constant 3 : i32
    %17 = vector.broadcast %c3_i32 : i32 to vector<8x128xi32>
    %18 = arith.cmpi eq, %0, %17 : vector<8x128xi32>
    %c3 = arith.constant 3 : index
    %19 = memref.load %arg2[%c3] : memref<100xf32, #tpu.memory_space<smem>>
    %20 = vector.broadcast %19 : f32 to vector<8x128xf32>
    %21 = arith.select %18, %20, %16 : vector<8x128xi1>, vector<8x128xf32>
    %c4_i32 = arith.constant 4 : i32
    %22 = vector.broadcast %c4_i32 : i32 to vector<8x128xi32>
    %23 = arith.cmpi eq, %0, %22 : vector<8x128xi32>
    %c4 = arith.constant 4 : index
    %24 = memref.load %arg2[%c4] : memref<100xf32, #tpu.memory_space<smem>>
    %25 = vector.broadcast %24 : f32 to vector<8x128xf32>
    %26 = arith.select %23, %25, %21 : vector<8x128xi1>, vector<8x128xf32>
    %c5_i32 = arith.constant 5 : i32
    %27 = vector.broadcast %c5_i32 : i32 to vector<8x128xi32>
    %28 = arith.cmpi eq, %0, %27 : vector<8x128xi32>
    %c5 = arith.constant 5 : index
    %29 = memref.load %arg2[%c5] : memref<100xf32, #tpu.memory_space<smem>>
    %30 = vector.broadcast %29 : f32 to vector<8x128xf32>
    %31 = arith.select %28, %30, %26 : vector<8x128xi1>, vector<8x128xf32>
    %c6_i32 = arith.constant 6 : i32
    %32 = vector.broadcast %c6_i32 : i32 to vector<8x128xi32>
    %33 = arith.cmpi eq, %0, %32 : vector<8x128xi32>
    %c6 = arith.constant 6 : index
    %34 = memref.load %arg2[%c6] : memref<100xf32, #tpu.memory_space<smem>>
    %35 = vector.broadcast %34 : f32 to vector<8x128xf32>
    %36 = arith.select %33, %35, %31 : vector<8x128xi1>, vector<8x128xf32>
    %c7_i32 = arith.constant 7 : i32
    %37 = vector.broadcast %c7_i32 : i32 to vector<8x128xi32>
    %38 = arith.cmpi eq, %0, %37 : vector<8x128xi32>
    %c7 = arith.constant 7 : index
    %39 = memref.load %arg2[%c7] : memref<100xf32, #tpu.memory_space<smem>>
    %40 = vector.broadcast %39 : f32 to vector<8x128xf32>
    %41 = arith.select %38, %40, %36 : vector<8x128xi1>, vector<8x128xf32>
    %c8_i32 = arith.constant 8 : i32
    %42 = vector.broadcast %c8_i32 : i32 to vector<8x128xi32>
    %43 = arith.cmpi eq, %0, %42 : vector<8x128xi32>
    %c8 = arith.constant 8 : index
    %44 = memref.load %arg2[%c8] : memref<100xf32, #tpu.memory_space<smem>>
    %45 = vector.broadcast %44 : f32 to vector<8x128xf32>
    %46 = arith.select %43, %45, %41 : vector<8x128xi1>, vector<8x128xf32>
    %c9_i32 = arith.constant 9 : i32
    %47 = vector.broadcast %c9_i32 : i32 to vector<8x128xi32>
    %48 = arith.cmpi eq, %0, %47 : vector<8x128xi32>
    %c9 = arith.constant 9 : index
    %49 = memref.load %arg2[%c9] : memref<100xf32, #tpu.memory_space<smem>>
    %50 = vector.broadcast %49 : f32 to vector<8x128xf32>
    %51 = arith.select %48, %50, %46 : vector<8x128xi1>, vector<8x128xf32>
    %c10_i32 = arith.constant 10 : i32
    %52 = vector.broadcast %c10_i32 : i32 to vector<8x128xi32>
    %53 = arith.cmpi eq, %0, %52 : vector<8x128xi32>
    %c10 = arith.constant 10 : index
    %54 = memref.load %arg2[%c10] : memref<100xf32, #tpu.memory_space<smem>>
    %55 = vector.broadcast %54 : f32 to vector<8x128xf32>
    %56 = arith.select %53, %55, %51 : vector<8x128xi1>, vector<8x128xf32>
    %c11_i32 = arith.constant 11 : i32
    %57 = vector.broadcast %c11_i32 : i32 to vector<8x128xi32>
    %58 = arith.cmpi eq, %0, %57 : vector<8x128xi32>
    %c11 = arith.constant 11 : index
    %59 = memref.load %arg2[%c11] : memref<100xf32, #tpu.memory_space<smem>>
    %60 = vector.broadcast %59 : f32 to vector<8x128xf32>
    %61 = arith.select %58, %60, %56 : vector<8x128xi1>, vector<8x128xf32>
    %c12_i32 = arith.constant 12 : i32
    %62 = vector.broadcast %c12_i32 : i32 to vector<8x128xi32>
    %63 = arith.cmpi eq, %0, %62 : vector<8x128xi32>
    %c12 = arith.constant 12 : index
    %64 = memref.load %arg2[%c12] : memref<100xf32, #tpu.memory_space<smem>>
    %65 = vector.broadcast %64 : f32 to vector<8x128xf32>
    %66 = arith.select %63, %65, %61 : vector<8x128xi1>, vector<8x128xf32>
    %c13_i32 = arith.constant 13 : i32
    %67 = vector.broadcast %c13_i32 : i32 to vector<8x128xi32>
    %68 = arith.cmpi eq, %0, %67 : vector<8x128xi32>
    %c13 = arith.constant 13 : index
    %69 = memref.load %arg2[%c13] : memref<100xf32, #tpu.memory_space<smem>>
    %70 = vector.broadcast %69 : f32 to vector<8x128xf32>
    %71 = arith.select %68, %70, %66 : vector<8x128xi1>, vector<8x128xf32>
    %c14_i32 = arith.constant 14 : i32
    %72 = vector.broadcast %c14_i32 : i32 to vector<8x128xi32>
    %73 = arith.cmpi eq, %0, %72 : vector<8x128xi32>
    %c14 = arith.constant 14 : index
    %74 = memref.load %arg2[%c14] : memref<100xf32, #tpu.memory_space<smem>>
    %75 = vector.broadcast %74 : f32 to vector<8x128xf32>
    %76 = arith.select %73, %75, %71 : vector<8x128xi1>, vector<8x128xf32>
    %c15_i32 = arith.constant 15 : i32
    %77 = vector.broadcast %c15_i32 : i32 to vector<8x128xi32>
    %78 = arith.cmpi eq, %0, %77 : vector<8x128xi32>
    %c15 = arith.constant 15 : index
    %79 = memref.load %arg2[%c15] : memref<100xf32, #tpu.memory_space<smem>>
    %80 = vector.broadcast %79 : f32 to vector<8x128xf32>
    %81 = arith.select %78, %80, %76 : vector<8x128xi1>, vector<8x128xf32>
    %c16_i32 = arith.constant 16 : i32
    %82 = vector.broadcast %c16_i32 : i32 to vector<8x128xi32>
    %83 = arith.cmpi eq, %0, %82 : vector<8x128xi32>
    %c16 = arith.constant 16 : index
    %84 = memref.load %arg2[%c16] : memref<100xf32, #tpu.memory_space<smem>>
    %85 = vector.broadcast %84 : f32 to vector<8x128xf32>
    %86 = arith.select %83, %85, %81 : vector<8x128xi1>, vector<8x128xf32>
    %c17_i32 = arith.constant 17 : i32
    %87 = vector.broadcast %c17_i32 : i32 to vector<8x128xi32>
    %88 = arith.cmpi eq, %0, %87 : vector<8x128xi32>
    %c17 = arith.constant 17 : index
    %89 = memref.load %arg2[%c17] : memref<100xf32, #tpu.memory_space<smem>>
    %90 = vector.broadcast %89 : f32 to vector<8x128xf32>
    %91 = arith.select %88, %90, %86 : vector<8x128xi1>, vector<8x128xf32>
    %c18_i32 = arith.constant 18 : i32
    %92 = vector.broadcast %c18_i32 : i32 to vector<8x128xi32>
    %93 = arith.cmpi eq, %0, %92 : vector<8x128xi32>
    %c18 = arith.constant 18 : index
    %94 = memref.load %arg2[%c18] : memref<100xf32, #tpu.memory_space<smem>>
    %95 = vector.broadcast %94 : f32 to vector<8x128xf32>
    %96 = arith.select %93, %95, %91 : vector<8x128xi1>, vector<8x128xf32>
    %c19_i32 = arith.constant 19 : i32
    %97 = vector.broadcast %c19_i32 : i32 to vector<8x128xi32>
    %98 = arith.cmpi eq, %0, %97 : vector<8x128xi32>
    %c19 = arith.constant 19 : index
    %99 = memref.load %arg2[%c19] : memref<100xf32, #tpu.memory_space<smem>>
    %100 = vector.broadcast %99 : f32 to vector<8x128xf32>
    %101 = arith.select %98, %100, %96 : vector<8x128xi1>, vector<8x128xf32>
    %c20_i32 = arith.constant 20 : i32
    %102 = vector.broadcast %c20_i32 : i32 to vector<8x128xi32>
    %103 = arith.cmpi eq, %0, %102 : vector<8x128xi32>
    %c20 = arith.constant 20 : index
    %104 = memref.load %arg2[%c20] : memref<100xf32, #tpu.memory_space<smem>>
    %105 = vector.broadcast %104 : f32 to vector<8x128xf32>
    %106 = arith.select %103, %105, %101 : vector<8x128xi1>, vector<8x128xf32>
    %c21_i32 = arith.constant 21 : i32
    %107 = vector.broadcast %c21_i32 : i32 to vector<8x128xi32>
    %108 = arith.cmpi eq, %0, %107 : vector<8x128xi32>
    %c21 = arith.constant 21 : index
    %109 = memref.load %arg2[%c21] : memref<100xf32, #tpu.memory_space<smem>>
    %110 = vector.broadcast %109 : f32 to vector<8x128xf32>
    %111 = arith.select %108, %110, %106 : vector<8x128xi1>, vector<8x128xf32>
    %c22_i32 = arith.constant 22 : i32
    %112 = vector.broadcast %c22_i32 : i32 to vector<8x128xi32>
    %113 = arith.cmpi eq, %0, %112 : vector<8x128xi32>
    %c22 = arith.constant 22 : index
    %114 = memref.load %arg2[%c22] : memref<100xf32, #tpu.memory_space<smem>>
    %115 = vector.broadcast %114 : f32 to vector<8x128xf32>
    %116 = arith.select %113, %115, %111 : vector<8x128xi1>, vector<8x128xf32>
    %c23_i32 = arith.constant 23 : i32
    %117 = vector.broadcast %c23_i32 : i32 to vector<8x128xi32>
    %118 = arith.cmpi eq, %0, %117 : vector<8x128xi32>
    %c23 = arith.constant 23 : index
    %119 = memref.load %arg2[%c23] : memref<100xf32, #tpu.memory_space<smem>>
    %120 = vector.broadcast %119 : f32 to vector<8x128xf32>
    %121 = arith.select %118, %120, %116 : vector<8x128xi1>, vector<8x128xf32>
    %c24_i32 = arith.constant 24 : i32
    %122 = vector.broadcast %c24_i32 : i32 to vector<8x128xi32>
    %123 = arith.cmpi eq, %0, %122 : vector<8x128xi32>
    %c24 = arith.constant 24 : index
    %124 = memref.load %arg2[%c24] : memref<100xf32, #tpu.memory_space<smem>>
    %125 = vector.broadcast %124 : f32 to vector<8x128xf32>
    %126 = arith.select %123, %125, %121 : vector<8x128xi1>, vector<8x128xf32>
    %c25_i32 = arith.constant 25 : i32
    %127 = vector.broadcast %c25_i32 : i32 to vector<8x128xi32>
    %128 = arith.cmpi eq, %0, %127 : vector<8x128xi32>
    %c25 = arith.constant 25 : index
    %129 = memref.load %arg2[%c25] : memref<100xf32, #tpu.memory_space<smem>>
    %130 = vector.broadcast %129 : f32 to vector<8x128xf32>
    %131 = arith.select %128, %130, %126 : vector<8x128xi1>, vector<8x128xf32>
    %c26_i32 = arith.constant 26 : i32
    %132 = vector.broadcast %c26_i32 : i32 to vector<8x128xi32>
    %133 = arith.cmpi eq, %0, %132 : vector<8x128xi32>
    %c26 = arith.constant 26 : index
    %134 = memref.load %arg2[%c26] : memref<100xf32, #tpu.memory_space<smem>>
    %135 = vector.broadcast %134 : f32 to vector<8x128xf32>
    %136 = arith.select %133, %135, %131 : vector<8x128xi1>, vector<8x128xf32>
    %c27_i32 = arith.constant 27 : i32
    %137 = vector.broadcast %c27_i32 : i32 to vector<8x128xi32>
    %138 = arith.cmpi eq, %0, %137 : vector<8x128xi32>
    %c27 = arith.constant 27 : index
    %139 = memref.load %arg2[%c27] : memref<100xf32, #tpu.memory_space<smem>>
    %140 = vector.broadcast %139 : f32 to vector<8x128xf32>
    %141 = arith.select %138, %140, %136 : vector<8x128xi1>, vector<8x128xf32>
    %c28_i32 = arith.constant 28 : i32
    %142 = vector.broadcast %c28_i32 : i32 to vector<8x128xi32>
    %143 = arith.cmpi eq, %0, %142 : vector<8x128xi32>
    %c28 = arith.constant 28 : index
    %144 = memref.load %arg2[%c28] : memref<100xf32, #tpu.memory_space<smem>>
    %145 = vector.broadcast %144 : f32 to vector<8x128xf32>
    %146 = arith.select %143, %145, %141 : vector<8x128xi1>, vector<8x128xf32>
    %c29_i32 = arith.constant 29 : i32
    %147 = vector.broadcast %c29_i32 : i32 to vector<8x128xi32>
    %148 = arith.cmpi eq, %0, %147 : vector<8x128xi32>
    %c29 = arith.constant 29 : index
    %149 = memref.load %arg2[%c29] : memref<100xf32, #tpu.memory_space<smem>>
    %150 = vector.broadcast %149 : f32 to vector<8x128xf32>
    %151 = arith.select %148, %150, %146 : vector<8x128xi1>, vector<8x128xf32>
    %c30_i32 = arith.constant 30 : i32
    %152 = vector.broadcast %c30_i32 : i32 to vector<8x128xi32>
    %153 = arith.cmpi eq, %0, %152 : vector<8x128xi32>
    %c30 = arith.constant 30 : index
    %154 = memref.load %arg2[%c30] : memref<100xf32, #tpu.memory_space<smem>>
    %155 = vector.broadcast %154 : f32 to vector<8x128xf32>
    %156 = arith.select %153, %155, %151 : vector<8x128xi1>, vector<8x128xf32>
    %c31_i32 = arith.constant 31 : i32
    %157 = vector.broadcast %c31_i32 : i32 to vector<8x128xi32>
    %158 = arith.cmpi eq, %0, %157 : vector<8x128xi32>
    %c31 = arith.constant 31 : index
    %159 = memref.load %arg2[%c31] : memref<100xf32, #tpu.memory_space<smem>>
    %160 = vector.broadcast %159 : f32 to vector<8x128xf32>
    %161 = arith.select %158, %160, %156 : vector<8x128xi1>, vector<8x128xf32>
    %c32_i32 = arith.constant 32 : i32
    %162 = vector.broadcast %c32_i32 : i32 to vector<8x128xi32>
    %163 = arith.cmpi eq, %0, %162 : vector<8x128xi32>
    %c32 = arith.constant 32 : index
    %164 = memref.load %arg2[%c32] : memref<100xf32, #tpu.memory_space<smem>>
    %165 = vector.broadcast %164 : f32 to vector<8x128xf32>
    %166 = arith.select %163, %165, %161 : vector<8x128xi1>, vector<8x128xf32>
    %c33_i32 = arith.constant 33 : i32
    %167 = vector.broadcast %c33_i32 : i32 to vector<8x128xi32>
    %168 = arith.cmpi eq, %0, %167 : vector<8x128xi32>
    %c33 = arith.constant 33 : index
    %169 = memref.load %arg2[%c33] : memref<100xf32, #tpu.memory_space<smem>>
    %170 = vector.broadcast %169 : f32 to vector<8x128xf32>
    %171 = arith.select %168, %170, %166 : vector<8x128xi1>, vector<8x128xf32>
    %c34_i32 = arith.constant 34 : i32
    %172 = vector.broadcast %c34_i32 : i32 to vector<8x128xi32>
    %173 = arith.cmpi eq, %0, %172 : vector<8x128xi32>
    %c34 = arith.constant 34 : index
    %174 = memref.load %arg2[%c34] : memref<100xf32, #tpu.memory_space<smem>>
    %175 = vector.broadcast %174 : f32 to vector<8x128xf32>
    %176 = arith.select %173, %175, %171 : vector<8x128xi1>, vector<8x128xf32>
    %c35_i32 = arith.constant 35 : i32
    %177 = vector.broadcast %c35_i32 : i32 to vector<8x128xi32>
    %178 = arith.cmpi eq, %0, %177 : vector<8x128xi32>
    %c35 = arith.constant 35 : index
    %179 = memref.load %arg2[%c35] : memref<100xf32, #tpu.memory_space<smem>>
    %180 = vector.broadcast %179 : f32 to vector<8x128xf32>
    %181 = arith.select %178, %180, %176 : vector<8x128xi1>, vector<8x128xf32>
    %c36_i32 = arith.constant 36 : i32
    %182 = vector.broadcast %c36_i32 : i32 to vector<8x128xi32>
    %183 = arith.cmpi eq, %0, %182 : vector<8x128xi32>
    %c36 = arith.constant 36 : index
    %184 = memref.load %arg2[%c36] : memref<100xf32, #tpu.memory_space<smem>>
    %185 = vector.broadcast %184 : f32 to vector<8x128xf32>
    %186 = arith.select %183, %185, %181 : vector<8x128xi1>, vector<8x128xf32>
    %c37_i32 = arith.constant 37 : i32
    %187 = vector.broadcast %c37_i32 : i32 to vector<8x128xi32>
    %188 = arith.cmpi eq, %0, %187 : vector<8x128xi32>
    %c37 = arith.constant 37 : index
    %189 = memref.load %arg2[%c37] : memref<100xf32, #tpu.memory_space<smem>>
    %190 = vector.broadcast %189 : f32 to vector<8x128xf32>
    %191 = arith.select %188, %190, %186 : vector<8x128xi1>, vector<8x128xf32>
    %c38_i32 = arith.constant 38 : i32
    %192 = vector.broadcast %c38_i32 : i32 to vector<8x128xi32>
    %193 = arith.cmpi eq, %0, %192 : vector<8x128xi32>
    %c38 = arith.constant 38 : index
    %194 = memref.load %arg2[%c38] : memref<100xf32, #tpu.memory_space<smem>>
    %195 = vector.broadcast %194 : f32 to vector<8x128xf32>
    %196 = arith.select %193, %195, %191 : vector<8x128xi1>, vector<8x128xf32>
    %c39_i32 = arith.constant 39 : i32
    %197 = vector.broadcast %c39_i32 : i32 to vector<8x128xi32>
    %198 = arith.cmpi eq, %0, %197 : vector<8x128xi32>
    %c39 = arith.constant 39 : index
    %199 = memref.load %arg2[%c39] : memref<100xf32, #tpu.memory_space<smem>>
    %200 = vector.broadcast %199 : f32 to vector<8x128xf32>
    %201 = arith.select %198, %200, %196 : vector<8x128xi1>, vector<8x128xf32>
    %c40_i32 = arith.constant 40 : i32
    %202 = vector.broadcast %c40_i32 : i32 to vector<8x128xi32>
    %203 = arith.cmpi eq, %0, %202 : vector<8x128xi32>
    %c40 = arith.constant 40 : index
    %204 = memref.load %arg2[%c40] : memref<100xf32, #tpu.memory_space<smem>>
    %205 = vector.broadcast %204 : f32 to vector<8x128xf32>
    %206 = arith.select %203, %205, %201 : vector<8x128xi1>, vector<8x128xf32>
    %c41_i32 = arith.constant 41 : i32
    %207 = vector.broadcast %c41_i32 : i32 to vector<8x128xi32>
    %208 = arith.cmpi eq, %0, %207 : vector<8x128xi32>
    %c41 = arith.constant 41 : index
    %209 = memref.load %arg2[%c41] : memref<100xf32, #tpu.memory_space<smem>>
    %210 = vector.broadcast %209 : f32 to vector<8x128xf32>
    %211 = arith.select %208, %210, %206 : vector<8x128xi1>, vector<8x128xf32>
    %c42_i32 = arith.constant 42 : i32
    %212 = vector.broadcast %c42_i32 : i32 to vector<8x128xi32>
    %213 = arith.cmpi eq, %0, %212 : vector<8x128xi32>
    %c42 = arith.constant 42 : index
    %214 = memref.load %arg2[%c42] : memref<100xf32, #tpu.memory_space<smem>>
    %215 = vector.broadcast %214 : f32 to vector<8x128xf32>
    %216 = arith.select %213, %215, %211 : vector<8x128xi1>, vector<8x128xf32>
    %c43_i32 = arith.constant 43 : i32
    %217 = vector.broadcast %c43_i32 : i32 to vector<8x128xi32>
    %218 = arith.cmpi eq, %0, %217 : vector<8x128xi32>
    %c43 = arith.constant 43 : index
    %219 = memref.load %arg2[%c43] : memref<100xf32, #tpu.memory_space<smem>>
    %220 = vector.broadcast %219 : f32 to vector<8x128xf32>
    %221 = arith.select %218, %220, %216 : vector<8x128xi1>, vector<8x128xf32>
    %c44_i32 = arith.constant 44 : i32
    %222 = vector.broadcast %c44_i32 : i32 to vector<8x128xi32>
    %223 = arith.cmpi eq, %0, %222 : vector<8x128xi32>
    %c44 = arith.constant 44 : index
    %224 = memref.load %arg2[%c44] : memref<100xf32, #tpu.memory_space<smem>>
    %225 = vector.broadcast %224 : f32 to vector<8x128xf32>
    %226 = arith.select %223, %225, %221 : vector<8x128xi1>, vector<8x128xf32>
    %c45_i32 = arith.constant 45 : i32
    %227 = vector.broadcast %c45_i32 : i32 to vector<8x128xi32>
    %228 = arith.cmpi eq, %0, %227 : vector<8x128xi32>
    %c45 = arith.constant 45 : index
    %229 = memref.load %arg2[%c45] : memref<100xf32, #tpu.memory_space<smem>>
    %230 = vector.broadcast %229 : f32 to vector<8x128xf32>
    %231 = arith.select %228, %230, %226 : vector<8x128xi1>, vector<8x128xf32>
    %c46_i32 = arith.constant 46 : i32
    %232 = vector.broadcast %c46_i32 : i32 to vector<8x128xi32>
    %233 = arith.cmpi eq, %0, %232 : vector<8x128xi32>
    %c46 = arith.constant 46 : index
    %234 = memref.load %arg2[%c46] : memref<100xf32, #tpu.memory_space<smem>>
    %235 = vector.broadcast %234 : f32 to vector<8x128xf32>
    %236 = arith.select %233, %235, %231 : vector<8x128xi1>, vector<8x128xf32>
    %c47_i32 = arith.constant 47 : i32
    %237 = vector.broadcast %c47_i32 : i32 to vector<8x128xi32>
    %238 = arith.cmpi eq, %0, %237 : vector<8x128xi32>
    %c47 = arith.constant 47 : index
    %239 = memref.load %arg2[%c47] : memref<100xf32, #tpu.memory_space<smem>>
    %240 = vector.broadcast %239 : f32 to vector<8x128xf32>
    %241 = arith.select %238, %240, %236 : vector<8x128xi1>, vector<8x128xf32>
    %c48_i32 = arith.constant 48 : i32
    %242 = vector.broadcast %c48_i32 : i32 to vector<8x128xi32>
    %243 = arith.cmpi eq, %0, %242 : vector<8x128xi32>
    %c48 = arith.constant 48 : index
    %244 = memref.load %arg2[%c48] : memref<100xf32, #tpu.memory_space<smem>>
    %245 = vector.broadcast %244 : f32 to vector<8x128xf32>
    %246 = arith.select %243, %245, %241 : vector<8x128xi1>, vector<8x128xf32>
    %c49_i32 = arith.constant 49 : i32
    %247 = vector.broadcast %c49_i32 : i32 to vector<8x128xi32>
    %248 = arith.cmpi eq, %0, %247 : vector<8x128xi32>
    %c49 = arith.constant 49 : index
    %249 = memref.load %arg2[%c49] : memref<100xf32, #tpu.memory_space<smem>>
    %250 = vector.broadcast %249 : f32 to vector<8x128xf32>
    %251 = arith.select %248, %250, %246 : vector<8x128xi1>, vector<8x128xf32>
    %c50_i32 = arith.constant 50 : i32
    %252 = vector.broadcast %c50_i32 : i32 to vector<8x128xi32>
    %253 = arith.cmpi eq, %0, %252 : vector<8x128xi32>
    %c50 = arith.constant 50 : index
    %254 = memref.load %arg2[%c50] : memref<100xf32, #tpu.memory_space<smem>>
    %255 = vector.broadcast %254 : f32 to vector<8x128xf32>
    %256 = arith.select %253, %255, %251 : vector<8x128xi1>, vector<8x128xf32>
    %c51_i32 = arith.constant 51 : i32
    %257 = vector.broadcast %c51_i32 : i32 to vector<8x128xi32>
    %258 = arith.cmpi eq, %0, %257 : vector<8x128xi32>
    %c51 = arith.constant 51 : index
    %259 = memref.load %arg2[%c51] : memref<100xf32, #tpu.memory_space<smem>>
    %260 = vector.broadcast %259 : f32 to vector<8x128xf32>
    %261 = arith.select %258, %260, %256 : vector<8x128xi1>, vector<8x128xf32>
    %c52_i32 = arith.constant 52 : i32
    %262 = vector.broadcast %c52_i32 : i32 to vector<8x128xi32>
    %263 = arith.cmpi eq, %0, %262 : vector<8x128xi32>
    %c52 = arith.constant 52 : index
    %264 = memref.load %arg2[%c52] : memref<100xf32, #tpu.memory_space<smem>>
    %265 = vector.broadcast %264 : f32 to vector<8x128xf32>
    %266 = arith.select %263, %265, %261 : vector<8x128xi1>, vector<8x128xf32>
    %c53_i32 = arith.constant 53 : i32
    %267 = vector.broadcast %c53_i32 : i32 to vector<8x128xi32>
    %268 = arith.cmpi eq, %0, %267 : vector<8x128xi32>
    %c53 = arith.constant 53 : index
    %269 = memref.load %arg2[%c53] : memref<100xf32, #tpu.memory_space<smem>>
    %270 = vector.broadcast %269 : f32 to vector<8x128xf32>
    %271 = arith.select %268, %270, %266 : vector<8x128xi1>, vector<8x128xf32>
    %c54_i32 = arith.constant 54 : i32
    %272 = vector.broadcast %c54_i32 : i32 to vector<8x128xi32>
    %273 = arith.cmpi eq, %0, %272 : vector<8x128xi32>
    %c54 = arith.constant 54 : index
    %274 = memref.load %arg2[%c54] : memref<100xf32, #tpu.memory_space<smem>>
    %275 = vector.broadcast %274 : f32 to vector<8x128xf32>
    %276 = arith.select %273, %275, %271 : vector<8x128xi1>, vector<8x128xf32>
    %c55_i32 = arith.constant 55 : i32
    %277 = vector.broadcast %c55_i32 : i32 to vector<8x128xi32>
    %278 = arith.cmpi eq, %0, %277 : vector<8x128xi32>
    %c55 = arith.constant 55 : index
    %279 = memref.load %arg2[%c55] : memref<100xf32, #tpu.memory_space<smem>>
    %280 = vector.broadcast %279 : f32 to vector<8x128xf32>
    %281 = arith.select %278, %280, %276 : vector<8x128xi1>, vector<8x128xf32>
    %c56_i32 = arith.constant 56 : i32
    %282 = vector.broadcast %c56_i32 : i32 to vector<8x128xi32>
    %283 = arith.cmpi eq, %0, %282 : vector<8x128xi32>
    %c56 = arith.constant 56 : index
    %284 = memref.load %arg2[%c56] : memref<100xf32, #tpu.memory_space<smem>>
    %285 = vector.broadcast %284 : f32 to vector<8x128xf32>
    %286 = arith.select %283, %285, %281 : vector<8x128xi1>, vector<8x128xf32>
    %c57_i32 = arith.constant 57 : i32
    %287 = vector.broadcast %c57_i32 : i32 to vector<8x128xi32>
    %288 = arith.cmpi eq, %0, %287 : vector<8x128xi32>
    %c57 = arith.constant 57 : index
    %289 = memref.load %arg2[%c57] : memref<100xf32, #tpu.memory_space<smem>>
    %290 = vector.broadcast %289 : f32 to vector<8x128xf32>
    %291 = arith.select %288, %290, %286 : vector<8x128xi1>, vector<8x128xf32>
    %c58_i32 = arith.constant 58 : i32
    %292 = vector.broadcast %c58_i32 : i32 to vector<8x128xi32>
    %293 = arith.cmpi eq, %0, %292 : vector<8x128xi32>
    %c58 = arith.constant 58 : index
    %294 = memref.load %arg2[%c58] : memref<100xf32, #tpu.memory_space<smem>>
    %295 = vector.broadcast %294 : f32 to vector<8x128xf32>
    %296 = arith.select %293, %295, %291 : vector<8x128xi1>, vector<8x128xf32>
    %c59_i32 = arith.constant 59 : i32
    %297 = vector.broadcast %c59_i32 : i32 to vector<8x128xi32>
    %298 = arith.cmpi eq, %0, %297 : vector<8x128xi32>
    %c59 = arith.constant 59 : index
    %299 = memref.load %arg2[%c59] : memref<100xf32, #tpu.memory_space<smem>>
    %300 = vector.broadcast %299 : f32 to vector<8x128xf32>
    %301 = arith.select %298, %300, %296 : vector<8x128xi1>, vector<8x128xf32>
    %c60_i32 = arith.constant 60 : i32
    %302 = vector.broadcast %c60_i32 : i32 to vector<8x128xi32>
    %303 = arith.cmpi eq, %0, %302 : vector<8x128xi32>
    %c60 = arith.constant 60 : index
    %304 = memref.load %arg2[%c60] : memref<100xf32, #tpu.memory_space<smem>>
    %305 = vector.broadcast %304 : f32 to vector<8x128xf32>
    %306 = arith.select %303, %305, %301 : vector<8x128xi1>, vector<8x128xf32>
    %c61_i32 = arith.constant 61 : i32
    %307 = vector.broadcast %c61_i32 : i32 to vector<8x128xi32>
    %308 = arith.cmpi eq, %0, %307 : vector<8x128xi32>
    %c61 = arith.constant 61 : index
    %309 = memref.load %arg2[%c61] : memref<100xf32, #tpu.memory_space<smem>>
    %310 = vector.broadcast %309 : f32 to vector<8x128xf32>
    %311 = arith.select %308, %310, %306 : vector<8x128xi1>, vector<8x128xf32>
    %c62_i32 = arith.constant 62 : i32
    %312 = vector.broadcast %c62_i32 : i32 to vector<8x128xi32>
    %313 = arith.cmpi eq, %0, %312 : vector<8x128xi32>
    %c62 = arith.constant 62 : index
    %314 = memref.load %arg2[%c62] : memref<100xf32, #tpu.memory_space<smem>>
    %315 = vector.broadcast %314 : f32 to vector<8x128xf32>
    %316 = arith.select %313, %315, %311 : vector<8x128xi1>, vector<8x128xf32>
    %c63_i32 = arith.constant 63 : i32
    %317 = vector.broadcast %c63_i32 : i32 to vector<8x128xi32>
    %318 = arith.cmpi eq, %0, %317 : vector<8x128xi32>
    %c63 = arith.constant 63 : index
    %319 = memref.load %arg2[%c63] : memref<100xf32, #tpu.memory_space<smem>>
    %320 = vector.broadcast %319 : f32 to vector<8x128xf32>
    %321 = arith.select %318, %320, %316 : vector<8x128xi1>, vector<8x128xf32>
    %c64_i32 = arith.constant 64 : i32
    %322 = vector.broadcast %c64_i32 : i32 to vector<8x128xi32>
    %323 = arith.cmpi eq, %0, %322 : vector<8x128xi32>
    %c64 = arith.constant 64 : index
    %324 = memref.load %arg2[%c64] : memref<100xf32, #tpu.memory_space<smem>>
    %325 = vector.broadcast %324 : f32 to vector<8x128xf32>
    %326 = arith.select %323, %325, %321 : vector<8x128xi1>, vector<8x128xf32>
    %c65_i32 = arith.constant 65 : i32
    %327 = vector.broadcast %c65_i32 : i32 to vector<8x128xi32>
    %328 = arith.cmpi eq, %0, %327 : vector<8x128xi32>
    %c65 = arith.constant 65 : index
    %329 = memref.load %arg2[%c65] : memref<100xf32, #tpu.memory_space<smem>>
    %330 = vector.broadcast %329 : f32 to vector<8x128xf32>
    %331 = arith.select %328, %330, %326 : vector<8x128xi1>, vector<8x128xf32>
    %c66_i32 = arith.constant 66 : i32
    %332 = vector.broadcast %c66_i32 : i32 to vector<8x128xi32>
    %333 = arith.cmpi eq, %0, %332 : vector<8x128xi32>
    %c66 = arith.constant 66 : index
    %334 = memref.load %arg2[%c66] : memref<100xf32, #tpu.memory_space<smem>>
    %335 = vector.broadcast %334 : f32 to vector<8x128xf32>
    %336 = arith.select %333, %335, %331 : vector<8x128xi1>, vector<8x128xf32>
    %c67_i32 = arith.constant 67 : i32
    %337 = vector.broadcast %c67_i32 : i32 to vector<8x128xi32>
    %338 = arith.cmpi eq, %0, %337 : vector<8x128xi32>
    %c67 = arith.constant 67 : index
    %339 = memref.load %arg2[%c67] : memref<100xf32, #tpu.memory_space<smem>>
    %340 = vector.broadcast %339 : f32 to vector<8x128xf32>
    %341 = arith.select %338, %340, %336 : vector<8x128xi1>, vector<8x128xf32>
    %c68_i32 = arith.constant 68 : i32
    %342 = vector.broadcast %c68_i32 : i32 to vector<8x128xi32>
    %343 = arith.cmpi eq, %0, %342 : vector<8x128xi32>
    %c68 = arith.constant 68 : index
    %344 = memref.load %arg2[%c68] : memref<100xf32, #tpu.memory_space<smem>>
    %345 = vector.broadcast %344 : f32 to vector<8x128xf32>
    %346 = arith.select %343, %345, %341 : vector<8x128xi1>, vector<8x128xf32>
    %c69_i32 = arith.constant 69 : i32
    %347 = vector.broadcast %c69_i32 : i32 to vector<8x128xi32>
    %348 = arith.cmpi eq, %0, %347 : vector<8x128xi32>
    %c69 = arith.constant 69 : index
    %349 = memref.load %arg2[%c69] : memref<100xf32, #tpu.memory_space<smem>>
    %350 = vector.broadcast %349 : f32 to vector<8x128xf32>
    %351 = arith.select %348, %350, %346 : vector<8x128xi1>, vector<8x128xf32>
    %c70_i32 = arith.constant 70 : i32
    %352 = vector.broadcast %c70_i32 : i32 to vector<8x128xi32>
    %353 = arith.cmpi eq, %0, %352 : vector<8x128xi32>
    %c70 = arith.constant 70 : index
    %354 = memref.load %arg2[%c70] : memref<100xf32, #tpu.memory_space<smem>>
    %355 = vector.broadcast %354 : f32 to vector<8x128xf32>
    %356 = arith.select %353, %355, %351 : vector<8x128xi1>, vector<8x128xf32>
    %c71_i32 = arith.constant 71 : i32
    %357 = vector.broadcast %c71_i32 : i32 to vector<8x128xi32>
    %358 = arith.cmpi eq, %0, %357 : vector<8x128xi32>
    %c71 = arith.constant 71 : index
    %359 = memref.load %arg2[%c71] : memref<100xf32, #tpu.memory_space<smem>>
    %360 = vector.broadcast %359 : f32 to vector<8x128xf32>
    %361 = arith.select %358, %360, %356 : vector<8x128xi1>, vector<8x128xf32>
    %c72_i32 = arith.constant 72 : i32
    %362 = vector.broadcast %c72_i32 : i32 to vector<8x128xi32>
    %363 = arith.cmpi eq, %0, %362 : vector<8x128xi32>
    %c72 = arith.constant 72 : index
    %364 = memref.load %arg2[%c72] : memref<100xf32, #tpu.memory_space<smem>>
    %365 = vector.broadcast %364 : f32 to vector<8x128xf32>
    %366 = arith.select %363, %365, %361 : vector<8x128xi1>, vector<8x128xf32>
    %c73_i32 = arith.constant 73 : i32
    %367 = vector.broadcast %c73_i32 : i32 to vector<8x128xi32>
    %368 = arith.cmpi eq, %0, %367 : vector<8x128xi32>
    %c73 = arith.constant 73 : index
    %369 = memref.load %arg2[%c73] : memref<100xf32, #tpu.memory_space<smem>>
    %370 = vector.broadcast %369 : f32 to vector<8x128xf32>
    %371 = arith.select %368, %370, %366 : vector<8x128xi1>, vector<8x128xf32>
    %c74_i32 = arith.constant 74 : i32
    %372 = vector.broadcast %c74_i32 : i32 to vector<8x128xi32>
    %373 = arith.cmpi eq, %0, %372 : vector<8x128xi32>
    %c74 = arith.constant 74 : index
    %374 = memref.load %arg2[%c74] : memref<100xf32, #tpu.memory_space<smem>>
    %375 = vector.broadcast %374 : f32 to vector<8x128xf32>
    %376 = arith.select %373, %375, %371 : vector<8x128xi1>, vector<8x128xf32>
    %c75_i32 = arith.constant 75 : i32
    %377 = vector.broadcast %c75_i32 : i32 to vector<8x128xi32>
    %378 = arith.cmpi eq, %0, %377 : vector<8x128xi32>
    %c75 = arith.constant 75 : index
    %379 = memref.load %arg2[%c75] : memref<100xf32, #tpu.memory_space<smem>>
    %380 = vector.broadcast %379 : f32 to vector<8x128xf32>
    %381 = arith.select %378, %380, %376 : vector<8x128xi1>, vector<8x128xf32>
    %c76_i32 = arith.constant 76 : i32
    %382 = vector.broadcast %c76_i32 : i32 to vector<8x128xi32>
    %383 = arith.cmpi eq, %0, %382 : vector<8x128xi32>
    %c76 = arith.constant 76 : index
    %384 = memref.load %arg2[%c76] : memref<100xf32, #tpu.memory_space<smem>>
    %385 = vector.broadcast %384 : f32 to vector<8x128xf32>
    %386 = arith.select %383, %385, %381 : vector<8x128xi1>, vector<8x128xf32>
    %c77_i32 = arith.constant 77 : i32
    %387 = vector.broadcast %c77_i32 : i32 to vector<8x128xi32>
    %388 = arith.cmpi eq, %0, %387 : vector<8x128xi32>
    %c77 = arith.constant 77 : index
    %389 = memref.load %arg2[%c77] : memref<100xf32, #tpu.memory_space<smem>>
    %390 = vector.broadcast %389 : f32 to vector<8x128xf32>
    %391 = arith.select %388, %390, %386 : vector<8x128xi1>, vector<8x128xf32>
    %c78_i32 = arith.constant 78 : i32
    %392 = vector.broadcast %c78_i32 : i32 to vector<8x128xi32>
    %393 = arith.cmpi eq, %0, %392 : vector<8x128xi32>
    %c78 = arith.constant 78 : index
    %394 = memref.load %arg2[%c78] : memref<100xf32, #tpu.memory_space<smem>>
    %395 = vector.broadcast %394 : f32 to vector<8x128xf32>
    %396 = arith.select %393, %395, %391 : vector<8x128xi1>, vector<8x128xf32>
    %c79_i32 = arith.constant 79 : i32
    %397 = vector.broadcast %c79_i32 : i32 to vector<8x128xi32>
    %398 = arith.cmpi eq, %0, %397 : vector<8x128xi32>
    %c79 = arith.constant 79 : index
    %399 = memref.load %arg2[%c79] : memref<100xf32, #tpu.memory_space<smem>>
    %400 = vector.broadcast %399 : f32 to vector<8x128xf32>
    %401 = arith.select %398, %400, %396 : vector<8x128xi1>, vector<8x128xf32>
    %c80_i32 = arith.constant 80 : i32
    %402 = vector.broadcast %c80_i32 : i32 to vector<8x128xi32>
    %403 = arith.cmpi eq, %0, %402 : vector<8x128xi32>
    %c80 = arith.constant 80 : index
    %404 = memref.load %arg2[%c80] : memref<100xf32, #tpu.memory_space<smem>>
    %405 = vector.broadcast %404 : f32 to vector<8x128xf32>
    %406 = arith.select %403, %405, %401 : vector<8x128xi1>, vector<8x128xf32>
    %c81_i32 = arith.constant 81 : i32
    %407 = vector.broadcast %c81_i32 : i32 to vector<8x128xi32>
    %408 = arith.cmpi eq, %0, %407 : vector<8x128xi32>
    %c81 = arith.constant 81 : index
    %409 = memref.load %arg2[%c81] : memref<100xf32, #tpu.memory_space<smem>>
    %410 = vector.broadcast %409 : f32 to vector<8x128xf32>
    %411 = arith.select %408, %410, %406 : vector<8x128xi1>, vector<8x128xf32>
    %c82_i32 = arith.constant 82 : i32
    %412 = vector.broadcast %c82_i32 : i32 to vector<8x128xi32>
    %413 = arith.cmpi eq, %0, %412 : vector<8x128xi32>
    %c82 = arith.constant 82 : index
    %414 = memref.load %arg2[%c82] : memref<100xf32, #tpu.memory_space<smem>>
    %415 = vector.broadcast %414 : f32 to vector<8x128xf32>
    %416 = arith.select %413, %415, %411 : vector<8x128xi1>, vector<8x128xf32>
    %c83_i32 = arith.constant 83 : i32
    %417 = vector.broadcast %c83_i32 : i32 to vector<8x128xi32>
    %418 = arith.cmpi eq, %0, %417 : vector<8x128xi32>
    %c83 = arith.constant 83 : index
    %419 = memref.load %arg2[%c83] : memref<100xf32, #tpu.memory_space<smem>>
    %420 = vector.broadcast %419 : f32 to vector<8x128xf32>
    %421 = arith.select %418, %420, %416 : vector<8x128xi1>, vector<8x128xf32>
    %c84_i32 = arith.constant 84 : i32
    %422 = vector.broadcast %c84_i32 : i32 to vector<8x128xi32>
    %423 = arith.cmpi eq, %0, %422 : vector<8x128xi32>
    %c84 = arith.constant 84 : index
    %424 = memref.load %arg2[%c84] : memref<100xf32, #tpu.memory_space<smem>>
    %425 = vector.broadcast %424 : f32 to vector<8x128xf32>
    %426 = arith.select %423, %425, %421 : vector<8x128xi1>, vector<8x128xf32>
    %c85_i32 = arith.constant 85 : i32
    %427 = vector.broadcast %c85_i32 : i32 to vector<8x128xi32>
    %428 = arith.cmpi eq, %0, %427 : vector<8x128xi32>
    %c85 = arith.constant 85 : index
    %429 = memref.load %arg2[%c85] : memref<100xf32, #tpu.memory_space<smem>>
    %430 = vector.broadcast %429 : f32 to vector<8x128xf32>
    %431 = arith.select %428, %430, %426 : vector<8x128xi1>, vector<8x128xf32>
    %c86_i32 = arith.constant 86 : i32
    %432 = vector.broadcast %c86_i32 : i32 to vector<8x128xi32>
    %433 = arith.cmpi eq, %0, %432 : vector<8x128xi32>
    %c86 = arith.constant 86 : index
    %434 = memref.load %arg2[%c86] : memref<100xf32, #tpu.memory_space<smem>>
    %435 = vector.broadcast %434 : f32 to vector<8x128xf32>
    %436 = arith.select %433, %435, %431 : vector<8x128xi1>, vector<8x128xf32>
    %c87_i32 = arith.constant 87 : i32
    %437 = vector.broadcast %c87_i32 : i32 to vector<8x128xi32>
    %438 = arith.cmpi eq, %0, %437 : vector<8x128xi32>
    %c87 = arith.constant 87 : index
    %439 = memref.load %arg2[%c87] : memref<100xf32, #tpu.memory_space<smem>>
    %440 = vector.broadcast %439 : f32 to vector<8x128xf32>
    %441 = arith.select %438, %440, %436 : vector<8x128xi1>, vector<8x128xf32>
    %c88_i32 = arith.constant 88 : i32
    %442 = vector.broadcast %c88_i32 : i32 to vector<8x128xi32>
    %443 = arith.cmpi eq, %0, %442 : vector<8x128xi32>
    %c88 = arith.constant 88 : index
    %444 = memref.load %arg2[%c88] : memref<100xf32, #tpu.memory_space<smem>>
    %445 = vector.broadcast %444 : f32 to vector<8x128xf32>
    %446 = arith.select %443, %445, %441 : vector<8x128xi1>, vector<8x128xf32>
    %c89_i32 = arith.constant 89 : i32
    %447 = vector.broadcast %c89_i32 : i32 to vector<8x128xi32>
    %448 = arith.cmpi eq, %0, %447 : vector<8x128xi32>
    %c89 = arith.constant 89 : index
    %449 = memref.load %arg2[%c89] : memref<100xf32, #tpu.memory_space<smem>>
    %450 = vector.broadcast %449 : f32 to vector<8x128xf32>
    %451 = arith.select %448, %450, %446 : vector<8x128xi1>, vector<8x128xf32>
    %c90_i32 = arith.constant 90 : i32
    %452 = vector.broadcast %c90_i32 : i32 to vector<8x128xi32>
    %453 = arith.cmpi eq, %0, %452 : vector<8x128xi32>
    %c90 = arith.constant 90 : index
    %454 = memref.load %arg2[%c90] : memref<100xf32, #tpu.memory_space<smem>>
    %455 = vector.broadcast %454 : f32 to vector<8x128xf32>
    %456 = arith.select %453, %455, %451 : vector<8x128xi1>, vector<8x128xf32>
    %c91_i32 = arith.constant 91 : i32
    %457 = vector.broadcast %c91_i32 : i32 to vector<8x128xi32>
    %458 = arith.cmpi eq, %0, %457 : vector<8x128xi32>
    %c91 = arith.constant 91 : index
    %459 = memref.load %arg2[%c91] : memref<100xf32, #tpu.memory_space<smem>>
    %460 = vector.broadcast %459 : f32 to vector<8x128xf32>
    %461 = arith.select %458, %460, %456 : vector<8x128xi1>, vector<8x128xf32>
    %c92_i32 = arith.constant 92 : i32
    %462 = vector.broadcast %c92_i32 : i32 to vector<8x128xi32>
    %463 = arith.cmpi eq, %0, %462 : vector<8x128xi32>
    %c92 = arith.constant 92 : index
    %464 = memref.load %arg2[%c92] : memref<100xf32, #tpu.memory_space<smem>>
    %465 = vector.broadcast %464 : f32 to vector<8x128xf32>
    %466 = arith.select %463, %465, %461 : vector<8x128xi1>, vector<8x128xf32>
    %c93_i32 = arith.constant 93 : i32
    %467 = vector.broadcast %c93_i32 : i32 to vector<8x128xi32>
    %468 = arith.cmpi eq, %0, %467 : vector<8x128xi32>
    %c93 = arith.constant 93 : index
    %469 = memref.load %arg2[%c93] : memref<100xf32, #tpu.memory_space<smem>>
    %470 = vector.broadcast %469 : f32 to vector<8x128xf32>
    %471 = arith.select %468, %470, %466 : vector<8x128xi1>, vector<8x128xf32>
    %c94_i32 = arith.constant 94 : i32
    %472 = vector.broadcast %c94_i32 : i32 to vector<8x128xi32>
    %473 = arith.cmpi eq, %0, %472 : vector<8x128xi32>
    %c94 = arith.constant 94 : index
    %474 = memref.load %arg2[%c94] : memref<100xf32, #tpu.memory_space<smem>>
    %475 = vector.broadcast %474 : f32 to vector<8x128xf32>
    %476 = arith.select %473, %475, %471 : vector<8x128xi1>, vector<8x128xf32>
    %c95_i32 = arith.constant 95 : i32
    %477 = vector.broadcast %c95_i32 : i32 to vector<8x128xi32>
    %478 = arith.cmpi eq, %0, %477 : vector<8x128xi32>
    %c95 = arith.constant 95 : index
    %479 = memref.load %arg2[%c95] : memref<100xf32, #tpu.memory_space<smem>>
    %480 = vector.broadcast %479 : f32 to vector<8x128xf32>
    %481 = arith.select %478, %480, %476 : vector<8x128xi1>, vector<8x128xf32>
    %c96_i32 = arith.constant 96 : i32
    %482 = vector.broadcast %c96_i32 : i32 to vector<8x128xi32>
    %483 = arith.cmpi eq, %0, %482 : vector<8x128xi32>
    %c96 = arith.constant 96 : index
    %484 = memref.load %arg2[%c96] : memref<100xf32, #tpu.memory_space<smem>>
    %485 = vector.broadcast %484 : f32 to vector<8x128xf32>
    %486 = arith.select %483, %485, %481 : vector<8x128xi1>, vector<8x128xf32>
    %c97_i32 = arith.constant 97 : i32
    %487 = vector.broadcast %c97_i32 : i32 to vector<8x128xi32>
    %488 = arith.cmpi eq, %0, %487 : vector<8x128xi32>
    %c97 = arith.constant 97 : index
    %489 = memref.load %arg2[%c97] : memref<100xf32, #tpu.memory_space<smem>>
    %490 = vector.broadcast %489 : f32 to vector<8x128xf32>
    %491 = arith.select %488, %490, %486 : vector<8x128xi1>, vector<8x128xf32>
    %c98_i32 = arith.constant 98 : i32
    %492 = vector.broadcast %c98_i32 : i32 to vector<8x128xi32>
    %493 = arith.cmpi eq, %0, %492 : vector<8x128xi32>
    %c98 = arith.constant 98 : index
    %494 = memref.load %arg2[%c98] : memref<100xf32, #tpu.memory_space<smem>>
    %495 = vector.broadcast %494 : f32 to vector<8x128xf32>
    %496 = arith.select %493, %495, %491 : vector<8x128xi1>, vector<8x128xf32>
    %c99_i32 = arith.constant 99 : i32
    %497 = vector.broadcast %c99_i32 : i32 to vector<8x128xi32>
    %498 = arith.cmpi eq, %0, %497 : vector<8x128xi32>
    %c99 = arith.constant 99 : index
    %499 = memref.load %arg2[%c99] : memref<100xf32, #tpu.memory_space<smem>>
    %500 = vector.broadcast %499 : f32 to vector<8x128xf32>
    %501 = arith.select %498, %500, %496 : vector<8x128xi1>, vector<8x128xf32>
    %c0_2 = arith.constant 0 : index
    %c0_3 = arith.constant 0 : index
    %502 = vector.load %arg3[%c0_2, %c0_3] : memref<8x128xf32, #tpu.memory_space<vmem>>, vector<8x128xf32>
    tpu.vector_store %arg3[%c0_2, %c0_3], %501 {strides = array<i32>} : memref<8x128xf32, #tpu.memory_space<vmem>>, vector<8x128xf32>,
    return
  }
  func.func @transform_0(%arg0: i32) -> (i32, i32) {
    %c0_i32 = arith.constant 0 : i32
    %c0_i32_0 = arith.constant 0 : i32
    return %arg0, %c0_i32 : i32, i32
  }
  func.func @transform_1(%arg0: i32) -> i32 {
    %c0_i32 = arith.constant 0 : i32
    %c0_i32_0 = arith.constant 0 : i32
    return %c0_i32 : i32
  }
  func.func @transform_2(%arg0: i32) -> (i32, i32) {
    %c0_i32 = arith.constant 0 : i32
    %c0_i32_0 = arith.constant 0 : i32
    return %arg0, %c0_i32 : i32, i32
  }
}

</mosaic_0001>

<bundles_post_ra>
// kernel: tpu_custom_call.1
= control target key start
LH: loop header
LB: loop body
LE: loop exit
PB: predicated region body
PF: predicated region fallthrough
CT: control target
= control target key end

     0   :  { %7 = vsyncpa [#allocation3], 0  ;;  %s744_s0 = inlined_call_operand.hbm [shape: s32[8,128], index: 0, kind: input, shape index: {}]   ;;  %s745_s1 = inlined_call_operand.vmem [shape: f32[100], index: 1, kind: input, shape index: {}]   ;;  %s746_s2 = inlined_call_operand.hbm [shape: f32[8,128], index: 2, kind: output, shape index: {}]  }
   0x1   :  { %8 = vsyncpa [#allocation5], 0 }
   0x2   :  { %9 = vsyncpa [#allocation4], 0  ;;  %s26_s11 = sshll.u32 %s745_s1, 4  ;;  %s615_s12 = smov [#allocation2]   ;;  %s27_s11 = int_to_ptr.vmem [resolvable:$true] %s26_s11 }
   0x3   :  { %s16_s13 = sshll.u32 %s615_s12, 4  ;;  %s17_s13 = int_to_ptr.vmem [resolvable:$true] %s16_s13 }
   0x4   :  { %s565_s14 = scalar_lea.vmem %s17_s13, 128  ;;  %p570_p1 = scmp.lt.s32.totalorder %s17_s13, %s17_s13 }
   0x5   :  { %p566_p0 = scmp.ne.s32.totalorder %s17_s13, %s565_s14  ;;  %p571_p2 = scmp.lt.s32.totalorder %s565_s14, %s565_s14 }
   0x7   :  { %p572_p3 = por %p571_p2, %p570_p1 }
   0x9   :  { %p573_p4 = pnand %p572_p3, %p566_p0 }
   0xb   :  { %576 = shalt.err (!%p573_p4)
}
   0xc   :  { %19 = dma.hbm_to_vmem [thread:$0]  %s744_s0, 128, %s17_s13, [#allocation3]  }
   0xd   :  { %s577_s17 = scalar_lea.vmem %s27_s11, 16  ;;  %p582_p6 = scmp.lt.s32.totalorder %s27_s11, %s27_s11 }
   0xe   :  { %p578_p5 = scmp.ne.s32.totalorder %s27_s11, %s577_s17  ;;  %p583_p7 = scmp.lt.s32.totalorder %s577_s17, %s577_s17 }
  0x10   :  { %p584_p8 = por %p583_p7, %p582_p6 }
  0x12   :  { %p585_p9 = pnand %p584_p8, %p578_p5 }
  0x14   :  { %588 = shalt.err (!%p585_p9)
}
  0x15   :  { %s616_s1 = smov [#allocation6]  }
  0x16   :  { %29 = dma.vmem_to_smem %s27_s11, 16, %s616_s1, [#allocation5]  }
  0x17   :  { %609 = dma.done.wait [#allocation3], 128  }
  0x18   :  { %610 = vsyncadd [#allocation3], 4294967168 }
  0x19   :  { %611 = dma.done.wait [#allocation5], 16  }
  0x1a   :  { %612 = vsyncadd [#allocation5], 4294967280 }
  0x1b   :  { %36 = sfence }
  0x1c   :  { %s39_s18 = sld [smem:[#allocation6]]  ;;  %v639_v0 = vld [vmem:[#allocation2] sm:$0xff] }
  0x1d   :  { %s455_s19 = sld [smem:[#allocation6 + $0x1]]  ;;  %vm38_vm0 = vcmp.eq.s32.totalorder %v639_v0, 0  ;;  %vm42_vm1 = vcmp.eq.s32.totalorder %v639_v0, 1  ;;  %vm46_vm2 = vcmp.eq.s32.totalorder %v639_v0, 2  ;;  %vm50_vm3 = vcmp.eq.s32.totalorder %v639_v0, 3 }
  0x1e   :  { %s456_s20 = sld [smem:[#allocation6 + $0x2]]  ;;  %vm54_vm4 = vcmp.eq.s32.totalorder %v639_v0, 4  ;;  %vm58_vm5 = vcmp.eq.s32.totalorder %v639_v0, 5  ;;  %vm62_vm6 = vcmp.eq.s32.totalorder %v639_v0, 6  ;;  %vm66_vm7 = vcmp.eq.s32.totalorder %v639_v0, 7 }
  0x1f   :  { %s457_s0 = sld [smem:[#allocation6 + $0x3]]  ;;  %vm70_vm8 = vcmp.eq.s32.totalorder %v639_v0, 8  ;;  %vm74_vm9 = vcmp.eq.s32.totalorder %v639_v0, 9  ;;  %vm78_vm10 = vcmp.eq.s32.totalorder %v639_v0, 10  ;;  %vm82_vm11 = vcmp.eq.s32.totalorder %v639_v0, 11 }
  0x20   :  { %s458_s21 = sld [smem:[#allocation6 + $0x4]]  ;;  %vm86_vm12 = vcmp.eq.s32.totalorder %v639_v0, 12  ;;  %vm90_vm13 = vcmp.eq.s32.totalorder %v639_v0, 13  ;;  %vm94_vm14 = vcmp.eq.s32.totalorder %v639_v0, 14  ;;  %vm98_vm15 = vcmp.eq.s32.totalorder %v639_v0, 15 }
  0x21   :  { %s459_s22 = sld [smem:[#allocation6 + $0x5]] }
  0x22   :  { %v40_v1 = vstv %s39_s18  ;;  %s460_s23 = sld [smem:[#allocation6 + $0x6]] }
  0x23   :  { %v41_v2 = vsel %vm38_vm0, %v40_v1, 0.0  ;;  %v44_v3 = vstv %s455_s19  ;;  %s461_s24 = sld [smem:[#allocation6 + $0x7]]  ;;  %vm102_vm0 = vcmp.eq.s32.totalorder %v639_v0, 16 }
  0x24   :  { %v45_v4 = vsel %vm42_vm1, %v44_v3, %v41_v2  ;;  %v48_v5 = vstv %s456_s20  ;;  %s462_s25 = sld [smem:[#allocation6 + $0x8]]  ;;  %vm106_vm1 = vcmp.eq.s32.totalorder %v639_v0, 17 }
  0x25   :  { %v49_v6 = vsel %vm46_vm2, %v48_v5, %v45_v4  ;;  %v52_v7 = vstv %s457_s0  ;;  %s463_s26 = sld [smem:[#allocation6 + $0x9]]  ;;  %vm110_vm2 = vcmp.eq.s32.totalorder %v639_v0, 18 }
  0x26   :  { %v53_v8 = vsel %vm50_vm3, %v52_v7, %v49_v6  ;;  %v56_v9 = vstv %s458_s21  ;;  %s464_s27 = sld [smem:[#allocation6 + $0xa]]  ;;  %vm114_vm3 = vcmp.eq.s32.totalorder %v639_v0, 19 }
  0x27   :  { %v57_v10 = vsel %vm54_vm4, %v56_v9, %v53_v8  ;;  %v60_v11 = vstv %s459_s22  ;;  %s465_s28 = sld [smem:[#allocation6 + $0xb]]  ;;  %vm118_vm4 = vcmp.eq.s32.totalorder %v639_v0, 20 }
  0x28   :  { %v61_v12 = vsel %vm58_vm5, %v60_v11, %v57_v10  ;;  %v64_v13 = vstv %s460_s23  ;;  %s466_s29 = sld [smem:[#allocation6 + $0xc]]  ;;  %vm122_vm5 = vcmp.eq.s32.totalorder %v639_v0, 21 }
  0x29   :  { %v65_v14 = vsel %vm62_vm6, %v64_v13, %v61_v12  ;;  %v68_v15 = vstv %s461_s24  ;;  %s467_s30 = sld [smem:[#allocation6 + $0xd]]  ;;  %vm126_vm6 = vcmp.eq.s32.totalorder %v639_v0, 22 }
  0x2a   :  { %v69_v16 = vsel %vm66_vm7, %v68_v15, %v65_v14  ;;  %v72_v17 = vstv %s462_s25  ;;  %s468_s3 = sld [smem:[#allocation6 + $0xe]]  ;;  %vm130_vm7 = vcmp.eq.s32.totalorder %v639_v0, 23 }
  0x2b   :  { %v73_v18 = vsel %vm70_vm8, %v72_v17, %v69_v16  ;;  %v76_v19 = vstv %s463_s26  ;;  %s469_s4 = sld [smem:[#allocation6 + $0xf]]  ;;  %vm134_vm8 = vcmp.eq.s32.totalorder %v639_v0, 24 }
  0x2c   :  { %v77_v20 = vsel %vm74_vm9, %v76_v19, %v73_v18  ;;  %v80_v21 = vstv %s464_s27  ;;  %s470_s5 = sld [smem:[#allocation6 + $0x10]]  ;;  %vm138_vm9 = vcmp.eq.s32.totalorder %v639_v0, 25 }
  0x2d   :  { %v81_v22 = vsel %vm78_vm10, %v80_v21, %v77_v20  ;;  %v84_v23 = vstv %s465_s28  ;;  %s471_s6 = sld [smem:[#allocation6 + $0x11]]  ;;  %vm142_vm10 = vcmp.eq.s32.totalorder %v639_v0, 26 }
  0x2e   :  { %v85_v24 = vsel %vm82_vm11, %v84_v23, %v81_v22  ;;  %v88_v25 = vstv %s466_s29  ;;  %s472_s7 = sld [smem:[#allocation6 + $0x12]]  ;;  %vm146_vm11 = vcmp.eq.s32.totalorder %v639_v0, 27 }
  0x2f   :  { %v89_v26 = vsel %vm86_vm12, %v88_v25, %v85_v24  ;;  %v92_v27 = vstv %s467_s30  ;;  %s473_s8 = sld [smem:[#allocation6 + $0x13]]  ;;  %vm150_vm12 = vcmp.eq.s32.totalorder %v639_v0, 28 }
  0x30   :  { %v93_v28 = vsel %vm90_vm13, %v92_v27, %v89_v26  ;;  %v96_v29 = vstv %s468_s3  ;;  %s474_s9 = sld [smem:[#allocation6 + $0x14]]  ;;  %vm154_vm13 = vcmp.eq.s32.totalorder %v639_v0, 29 }
  0x31   :  { %v97_v30 = vsel %vm94_vm14, %v96_v29, %v93_v28  ;;  %v100_v31 = vstv %s469_s4  ;;  %s475_s10 = sld [smem:[#allocation6 + $0x15]]  ;;  %vm158_vm14 = vcmp.eq.s32.totalorder %v639_v0, 30 }
  0x32   :  { %v101_v32 = vsel %vm98_vm15, %v100_v31, %v97_v30  ;;  %v104_v33 = vstv %s470_s5  ;;  %s476_s11 = sld [smem:[#allocation6 + $0x16]]  ;;  %vm162_vm15 = vcmp.eq.s32.totalorder %v639_v0, 31 }
  0x33   :  { %v105_v34 = vsel %vm102_vm0, %v104_v33, %v101_v32  ;;  %v108_v35 = vstv %s471_s6  ;;  %s477_s12 = sld [smem:[#allocation6 + $0x17]]  ;;  %vm166_vm0 = vcmp.eq.s32.totalorder %v639_v0, 32 }
  0x34   :  { %v109_v36 = vsel %vm106_vm1, %v108_v35, %v105_v34  ;;  %v112_v37 = vstv %s472_s7  ;;  %s478_s13 = sld [smem:[#allocation6 + $0x18]]  ;;  %vm170_vm1 = vcmp.eq.s32.totalorder %v639_v0, 33 }
  0x35   :  { %v113_v38 = vsel %vm110_vm2, %v112_v37, %v109_v36  ;;  %v116_v39 = vstv %s473_s8  ;;  %s479_s14 = sld [smem:[#allocation6 + $0x19]]  ;;  %vm174_vm2 = vcmp.eq.s32.totalorder %v639_v0, 34 }
  0x36   :  { %v117_v40 = vsel %vm114_vm3, %v116_v39, %v113_v38  ;;  %v120_v41 = vstv %s474_s9  ;;  %s480_s15 = sld [smem:[#allocation6 + $0x1a]]  ;;  %vm178_vm3 = vcmp.eq.s32.totalorder %v639_v0, 35 }
  0x37   :  { %v121_v42 = vsel %vm118_vm4, %v120_v41, %v117_v40  ;;  %v124_v43 = vstv %s475_s10  ;;  %s481_s16 = sld [smem:[#allocation6 + $0x1b]]  ;;  %vm182_vm4 = vcmp.eq.s32.totalorder %v639_v0, 36 }
  0x38   :  { %v125_v44 = vsel %vm122_vm5, %v124_v43, %v121_v42  ;;  %v128_v45 = vstv %s476_s11  ;;  %s482_s17 = sld [smem:[#allocation6 + $0x1c]]  ;;  %vm186_vm5 = vcmp.eq.s32.totalorder %v639_v0, 37 }
  0x39   :  { %v129_v46 = vsel %vm126_vm6, %v128_v45, %v125_v44  ;;  %v132_v47 = vstv %s477_s12  ;;  %s483_s1 = sld [smem:[#allocation6 + $0x1d]]  ;;  %vm190_vm6 = vcmp.eq.s32.totalorder %v639_v0, 38 }
  0x3a   :  { %v133_v48 = vsel %vm130_vm7, %v132_v47, %v129_v46  ;;  %v136_v49 = vstv %s478_s13  ;;  %s484_s18 = sld [smem:[#allocation6 + $0x1e]]  ;;  %vm194_vm7 = vcmp.eq.s32.totalorder %v639_v0, 39 }
  0x3b   :  { %v137_v50 = vsel %vm134_vm8, %v136_v49, %v133_v48  ;;  %v140_v51 = vstv %s479_s14  ;;  %s485_s19 = sld [smem:[#allocation6 + $0x1f]]  ;;  %vm198_vm8 = vcmp.eq.s32.totalorder %v639_v0, 40 }
  0x3c   :  { %v141_v52 = vsel %vm138_vm9, %v140_v51, %v137_v50  ;;  %v144_v53 = vstv %s480_s15  ;;  %s486_s20 = sld [smem:[#allocation6 + $0x20]]  ;;  %vm202_vm9 = vcmp.eq.s32.totalorder %v639_v0, 41 }
  0x3d   :  { %v145_v54 = vsel %vm142_vm10, %v144_v53, %v141_v52  ;;  %v148_v55 = vstv %s481_s16  ;;  %s487_s0 = sld [smem:[#allocation6 + $0x21]]  ;;  %vm206_vm10 = vcmp.eq.s32.totalorder %v639_v0, 42 }
  0x3e   :  { %v149_v56 = vsel %vm146_vm11, %v148_v55, %v145_v54  ;;  %v152_v57 = vstv %s482_s17  ;;  %s488_s21 = sld [smem:[#allocation6 + $0x22]]  ;;  %vm210_vm11 = vcmp.eq.s32.totalorder %v639_v0, 43 }
  0x3f   :  { %v153_v58 = vsel %vm150_vm12, %v152_v57, %v149_v56  ;;  %v156_v59 = vstv %s483_s1  ;;  %s489_s22 = sld [smem:[#allocation6 + $0x23]]  ;;  %vm214_vm12 = vcmp.eq.s32.totalorder %v639_v0, 44 }
  0x40   :  { %v157_v60 = vsel %vm154_vm13, %v156_v59, %v153_v58  ;;  %v160_v61 = vstv %s484_s18  ;;  %s490_s23 = sld [smem:[#allocation6 + $0x24]]  ;;  %vm218_vm13 = vcmp.eq.s32.totalorder %v639_v0, 45 }
  0x41   :  { %v161_v62 = vsel %vm158_vm14, %v160_v61, %v157_v60  ;;  %v164_v63 = vstv %s485_s19  ;;  %s491_s24 = sld [smem:[#allocation6 + $0x25]]  ;;  %vm222_vm14 = vcmp.eq.s32.totalorder %v639_v0, 46 }
  0x42   :  { %v165_v1 = vsel %vm162_vm15, %v164_v63, %v161_v62  ;;  %v168_v2 = vstv %s486_s20  ;;  %s492_s25 = sld [smem:[#allocation6 + $0x26]]  ;;  %vm226_vm15 = vcmp.eq.s32.totalorder %v639_v0, 47 }
  0x43   :  { %v169_v3 = vsel %vm166_vm0, %v168_v2, %v165_v1  ;;  %v172_v4 = vstv %s487_s0  ;;  %s493_s26 = sld [smem:[#allocation6 + $0x27]]  ;;  %vm230_vm0 = vcmp.eq.s32.totalorder %v639_v0, 48 }
  0x44   :  { %v173_v5 = vsel %vm170_vm1, %v172_v4, %v169_v3  ;;  %v176_v6 = vstv %s488_s21  ;;  %s494_s27 = sld [smem:[#allocation6 + $0x28]]  ;;  %vm234_vm1 = vcmp.eq.s32.totalorder %v639_v0, 49 }
  0x45   :  { %v177_v7 = vsel %vm174_vm2, %v176_v6, %v173_v5  ;;  %v180_v8 = vstv %s489_s22  ;;  %s495_s28 = sld [smem:[#allocation6 + $0x29]]  ;;  %vm238_vm2 = vcmp.eq.s32.totalorder %v639_v0, 50 }
  0x46   :  { %v181_v9 = vsel %vm178_vm3, %v180_v8, %v177_v7  ;;  %v184_v10 = vstv %s490_s23  ;;  %s496_s29 = sld [smem:[#allocation6 + $0x2a]]  ;;  %vm242_vm3 = vcmp.eq.s32.totalorder %v639_v0, 51 }
  0x47   :  { %v185_v11 = vsel %vm182_vm4, %v184_v10, %v181_v9  ;;  %v188_v12 = vstv %s491_s24  ;;  %s497_s30 = sld [smem:[#allocation6 + $0x2b]]  ;;  %vm246_vm4 = vcmp.eq.s32.totalorder %v639_v0, 52 }
  0x48   :  { %v189_v13 = vsel %vm186_vm5, %v188_v12, %v185_v11  ;;  %v192_v14 = vstv %s492_s25  ;;  %s498_s3 = sld [smem:[#allocation6 + $0x2c]]  ;;  %vm250_vm5 = vcmp.eq.s32.totalorder %v639_v0, 53 }
  0x49   :  { %v193_v15 = vsel %vm190_vm6, %v192_v14, %v189_v13  ;;  %v196_v16 = vstv %s493_s26  ;;  %s499_s4 = sld [smem:[#allocation6 + $0x2d]]  ;;  %vm254_vm6 = vcmp.eq.s32.totalorder %v639_v0, 54 }
  0x4a   :  { %v197_v17 = vsel %vm194_vm7, %v196_v16, %v193_v15  ;;  %v200_v18 = vstv %s494_s27  ;;  %s500_s5 = sld [smem:[#allocation6 + $0x2e]]  ;;  %vm258_vm7 = vcmp.eq.s32.totalorder %v639_v0, 55 }
  0x4b   :  { %v201_v19 = vsel %vm198_vm8, %v200_v18, %v197_v17  ;;  %v204_v20 = vstv %s495_s28  ;;  %s501_s6 = sld [smem:[#allocation6 + $0x2f]]  ;;  %vm262_vm8 = vcmp.eq.s32.totalorder %v639_v0, 56 }
  0x4c   :  { %v205_v21 = vsel %vm202_vm9, %v204_v20, %v201_v19  ;;  %v208_v22 = vstv %s496_s29  ;;  %s502_s7 = sld [smem:[#allocation6 + $0x30]]  ;;  %vm266_vm9 = vcmp.eq.s32.totalorder %v639_v0, 57 }
  0x4d   :  { %v209_v23 = vsel %vm206_vm10, %v208_v22, %v205_v21  ;;  %v212_v24 = vstv %s497_s30  ;;  %s503_s8 = sld [smem:[#allocation6 + $0x31]]  ;;  %vm270_vm10 = vcmp.eq.s32.totalorder %v639_v0, 58 }
  0x4e   :  { %v213_v25 = vsel %vm210_vm11, %v212_v24, %v209_v23  ;;  %v216_v26 = vstv %s498_s3  ;;  %s504_s9 = sld [smem:[#allocation6 + $0x32]]  ;;  %vm274_vm11 = vcmp.eq.s32.totalorder %v639_v0, 59 }
  0x4f   :  { %v217_v27 = vsel %vm214_vm12, %v216_v26, %v213_v25  ;;  %v220_v28 = vstv %s499_s4  ;;  %s505_s10 = sld [smem:[#allocation6 + $0x33]]  ;;  %vm278_vm12 = vcmp.eq.s32.totalorder %v639_v0, 60 }
  0x50   :  { %v221_v29 = vsel %vm218_vm13, %v220_v28, %v217_v27  ;;  %v224_v30 = vstv %s500_s5  ;;  %s506_s11 = sld [smem:[#allocation6 + $0x34]]  ;;  %vm282_vm13 = vcmp.eq.s32.totalorder %v639_v0, 61 }
  0x51   :  { %v225_v31 = vsel %vm222_vm14, %v224_v30, %v221_v29  ;;  %v228_v32 = vstv %s501_s6  ;;  %s507_s12 = sld [smem:[#allocation6 + $0x35]]  ;;  %vm286_vm14 = vcmp.eq.s32.totalorder %v639_v0, 62 }
  0x52   :  { %v229_v33 = vsel %vm226_vm15, %v228_v32, %v225_v31  ;;  %v232_v34 = vstv %s502_s7  ;;  %s508_s13 = sld [smem:[#allocation6 + $0x36]]  ;;  %vm290_vm15 = vcmp.eq.s32.totalorder %v639_v0, 63 }
  0x53   :  { %v233_v35 = vsel %vm230_vm0, %v232_v34, %v229_v33  ;;  %v236_v36 = vstv %s503_s8  ;;  %s509_s14 = sld [smem:[#allocation6 + $0x37]]  ;;  %vm294_vm0 = vcmp.eq.s32.totalorder %v639_v0, 64 }
  0x54   :  { %v237_v37 = vsel %vm234_vm1, %v236_v36, %v233_v35  ;;  %v240_v38 = vstv %s504_s9  ;;  %s510_s15 = sld [smem:[#allocation6 + $0x38]]  ;;  %vm298_vm1 = vcmp.eq.s32.totalorder %v639_v0, 65 }
  0x55   :  { %v241_v39 = vsel %vm238_vm2, %v240_v38, %v237_v37  ;;  %v244_v40 = vstv %s505_s10  ;;  %s511_s16 = sld [smem:[#allocation6 + $0x39]]  ;;  %vm302_vm2 = vcmp.eq.s32.totalorder %v639_v0, 66 }
  0x56   :  { %v245_v41 = vsel %vm242_vm3, %v244_v40, %v241_v39  ;;  %v248_v42 = vstv %s506_s11  ;;  %s512_s17 = sld [smem:[#allocation6 + $0x3a]]  ;;  %vm306_vm3 = vcmp.eq.s32.totalorder %v639_v0, 67 }
  0x57   :  { %v249_v43 = vsel %vm246_vm4, %v248_v42, %v245_v41  ;;  %v252_v44 = vstv %s507_s12  ;;  %s513_s1 = sld [smem:[#allocation6 + $0x3b]]  ;;  %vm310_vm4 = vcmp.eq.s32.totalorder %v639_v0, 68 }
  0x58   :  { %v253_v45 = vsel %vm250_vm5, %v252_v44, %v249_v43  ;;  %v256_v46 = vstv %s508_s13  ;;  %s514_s18 = sld [smem:[#allocation6 + $0x3c]]  ;;  %vm314_vm5 = vcmp.eq.s32.totalorder %v639_v0, 69 }
  0x59   :  { %v257_v47 = vsel %vm254_vm6, %v256_v46, %v253_v45  ;;  %v260_v48 = vstv %s509_s14  ;;  %s515_s19 = sld [smem:[#allocation6 + $0x3d]]  ;;  %vm318_vm6 = vcmp.eq.s32.totalorder %v639_v0, 70 }
  0x5a   :  { %v261_v49 = vsel %vm258_vm7, %v260_v48, %v257_v47  ;;  %v264_v50 = vstv %s510_s15  ;;  %s516_s20 = sld [smem:[#allocation6 + $0x3e]]  ;;  %vm322_vm7 = vcmp.eq.s32.totalorder %v639_v0, 71 }
  0x5b   :  { %v265_v51 = vsel %vm262_vm8, %v264_v50, %v261_v49  ;;  %v268_v52 = vstv %s511_s16  ;;  %s517_s0 = sld [smem:[#allocation6 + $0x3f]]  ;;  %vm326_vm8 = vcmp.eq.s32.totalorder %v639_v0, 72 }
  0x5c   :  { %v269_v53 = vsel %vm266_vm9, %v268_v52, %v265_v51  ;;  %v272_v54 = vstv %s512_s17  ;;  %s518_s21 = sld [smem:[#allocation6 + $0x40]]  ;;  %vm330_vm9 = vcmp.eq.s32.totalorder %v639_v0, 73 }
  0x5d   :  { %v273_v55 = vsel %vm270_vm10, %v272_v54, %v269_v53  ;;  %v276_v56 = vstv %s513_s1  ;;  %s519_s22 = sld [smem:[#allocation6 + $0x41]]  ;;  %vm334_vm10 = vcmp.eq.s32.totalorder %v639_v0, 74 }
  0x5e   :  { %v277_v57 = vsel %vm274_vm11, %v276_v56, %v273_v55  ;;  %v280_v58 = vstv %s514_s18  ;;  %s520_s23 = sld [smem:[#allocation6 + $0x42]]  ;;  %vm338_vm11 = vcmp.eq.s32.totalorder %v639_v0, 75 }
  0x5f   :  { %v281_v59 = vsel %vm278_vm12, %v280_v58, %v277_v57  ;;  %v284_v60 = vstv %s515_s19  ;;  %s521_s24 = sld [smem:[#allocation6 + $0x43]]  ;;  %vm342_vm12 = vcmp.eq.s32.totalorder %v639_v0, 76 }
  0x60   :  { %v285_v61 = vsel %vm282_vm13, %v284_v60, %v281_v59  ;;  %v288_v62 = vstv %s516_s20  ;;  %s522_s25 = sld [smem:[#allocation6 + $0x44]]  ;;  %vm346_vm13 = vcmp.eq.s32.totalorder %v639_v0, 77 }
  0x61   :  { %v289_v63 = vsel %vm286_vm14, %v288_v62, %v285_v61  ;;  %v292_v1 = vstv %s517_s0  ;;  %s523_s26 = sld [smem:[#allocation6 + $0x45]]  ;;  %vm350_vm14 = vcmp.eq.s32.totalorder %v639_v0, 78 }
  0x62   :  { %v293_v2 = vsel %vm290_vm15, %v292_v1, %v289_v63  ;;  %v296_v3 = vstv %s518_s21  ;;  %s524_s27 = sld [smem:[#allocation6 + $0x46]]  ;;  %vm354_vm15 = vcmp.eq.s32.totalorder %v639_v0, 79 }
  0x63   :  { %v297_v4 = vsel %vm294_vm0, %v296_v3, %v293_v2  ;;  %v300_v5 = vstv %s519_s22  ;;  %s525_s28 = sld [smem:[#allocation6 + $0x47]]  ;;  %vm358_vm0 = vcmp.eq.s32.totalorder %v639_v0, 80 }
  0x64   :  { %v301_v6 = vsel %vm298_vm1, %v300_v5, %v297_v4  ;;  %v304_v7 = vstv %s520_s23  ;;  %s526_s29 = sld [smem:[#allocation6 + $0x48]]  ;;  %vm362_vm1 = vcmp.eq.s32.totalorder %v639_v0, 81 }
  0x65   :  { %v305_v8 = vsel %vm302_vm2, %v304_v7, %v301_v6  ;;  %v308_v9 = vstv %s521_s24  ;;  %s527_s30 = sld [smem:[#allocation6 + $0x49]]  ;;  %vm366_vm2 = vcmp.eq.s32.totalorder %v639_v0, 82 }
  0x66   :  { %v309_v10 = vsel %vm306_vm3, %v308_v9, %v305_v8  ;;  %v312_v11 = vstv %s522_s25  ;;  %s528_s3 = sld [smem:[#allocation6 + $0x4a]]  ;;  %vm370_vm3 = vcmp.eq.s32.totalorder %v639_v0, 83 }
  0x67   :  { %v313_v12 = vsel %vm310_vm4, %v312_v11, %v309_v10  ;;  %v316_v13 = vstv %s523_s26  ;;  %s529_s4 = sld [smem:[#allocation6 + $0x4b]]  ;;  %vm374_vm4 = vcmp.eq.s32.totalorder %v639_v0, 84 }
  0x68   :  { %v317_v14 = vsel %vm314_vm5, %v316_v13, %v313_v12  ;;  %v320_v15 = vstv %s524_s27  ;;  %s530_s5 = sld [smem:[#allocation6 + $0x4c]]  ;;  %vm378_vm5 = vcmp.eq.s32.totalorder %v639_v0, 85  ;;  %s617_s27 = smov [#allocation7]  }
  0x69   :  { %v321_v16 = vsel %vm318_vm6, %v320_v15, %v317_v14  ;;  %v324_v17 = vstv %s525_s28  ;;  %s531_s6 = sld [smem:[#allocation6 + $0x4d]]  ;;  %vm382_vm6 = vcmp.eq.s32.totalorder %v639_v0, 86  ;;  %s445_s28 = sshll.u32 %s617_s27, 4  ;;  %s446_s28 = int_to_ptr.vmem [resolvable:$true] %s445_s28 }
  0x6a   :  { %v325_v18 = vsel %vm322_vm7, %v324_v17, %v321_v16  ;;  %v328_v19 = vstv %s526_s29  ;;  %s532_s7 = sld [smem:[#allocation6 + $0x4e]]  ;;  %vm386_vm7 = vcmp.eq.s32.totalorder %v639_v0, 87  ;;  %s589_s29 = scalar_lea.vmem %s446_s28, 128 }
  0x6b   :  { %v329_v20 = vsel %vm326_vm8, %v328_v19, %v325_v18  ;;  %v332_v21 = vstv %s527_s30  ;;  %s533_s8 = sld [smem:[#allocation6 + $0x4f]]  ;;  %vm390_vm8 = vcmp.eq.s32.totalorder %v639_v0, 88  ;;  %p590_p10 = scmp.ne.s32.totalorder %s446_s28, %s589_s29 }
  0x6c   :  { %v333_v22 = vsel %vm330_vm9, %v332_v21, %v329_v20  ;;  %v336_v23 = vstv %s528_s3  ;;  %s534_s9 = sld [smem:[#allocation6 + $0x50]]  ;;  %vm394_vm9 = vcmp.eq.s32.totalorder %v639_v0, 89  ;;  %p594_p11 = scmp.lt.s32.totalorder %s446_s28, %s446_s28 }
  0x6d   :  { %v337_v24 = vsel %vm334_vm10, %v336_v23, %v333_v22  ;;  %v340_v25 = vstv %s529_s4  ;;  %s535_s10 = sld [smem:[#allocation6 + $0x51]]  ;;  %vm398_vm10 = vcmp.eq.s32.totalorder %v639_v0, 90  ;;  %p595_p12 = scmp.lt.s32.totalorder %s589_s29, %s589_s29 }
  0x6e   :  { %v341_v26 = vsel %vm338_vm11, %v340_v25, %v337_v24  ;;  %v344_v27 = vstv %s530_s5  ;;  %s536_s11 = sld [smem:[#allocation6 + $0x52]]  ;;  %vm402_vm11 = vcmp.eq.s32.totalorder %v639_v0, 91 }
  0x6f   :  { %v345_v28 = vsel %vm342_vm12, %v344_v27, %v341_v26  ;;  %v348_v29 = vstv %s531_s6  ;;  %s537_s12 = sld [smem:[#allocation6 + $0x53]]  ;;  %vm406_vm12 = vcmp.eq.s32.totalorder %v639_v0, 92  ;;  %p596_p13 = por %p595_p12, %p594_p11 }
  0x70   :  { %v349_v30 = vsel %vm346_vm13, %v348_v29, %v345_v28  ;;  %v352_v31 = vstv %s532_s7  ;;  %s538_s13 = sld [smem:[#allocation6 + $0x54]]  ;;  %vm410_vm13 = vcmp.eq.s32.totalorder %v639_v0, 93 }
  0x71   :  { %v353_v32 = vsel %vm350_vm14, %v352_v31, %v349_v30  ;;  %v356_v33 = vstv %s533_s8  ;;  %s539_s14 = sld [smem:[#allocation6 + $0x55]]  ;;  %vm414_vm14 = vcmp.eq.s32.totalorder %v639_v0, 94  ;;  %p597_p0 = pnand %p596_p13, %p590_p10 }
  0x72   :  { %v357_v34 = vsel %vm354_vm15, %v356_v33, %v353_v32  ;;  %v360_v35 = vstv %s534_s9  ;;  %s540_s15 = sld [smem:[#allocation6 + $0x56]]  ;;  %vm418_vm15 = vcmp.eq.s32.totalorder %v639_v0, 95 }
  0x73   :  { %v361_v36 = vsel %vm358_vm0, %v360_v35, %v357_v34  ;;  %v364_v37 = vstv %s535_s10  ;;  %s541_s16 = sld [smem:[#allocation6 + $0x57]]  ;;  %vm422_vm0 = vcmp.eq.s32.totalorder %v639_v0, 96 }
  0x74   :  { %v365_v38 = vsel %vm362_vm1, %v364_v37, %v361_v36  ;;  %v368_v39 = vstv %s536_s11  ;;  %s542_s17 = sld [smem:[#allocation6 + $0x58]]  ;;  %vm426_vm1 = vcmp.eq.s32.totalorder %v639_v0, 97 }
  0x75   :  { %v369_v40 = vsel %vm366_vm2, %v368_v39, %v365_v38  ;;  %v372_v41 = vstv %s537_s12  ;;  %s543_s1 = sld [smem:[#allocation6 + $0x59]]  ;;  %vm430_vm2 = vcmp.eq.s32.totalorder %v639_v0, 98 }
  0x76   :  { %v373_v42 = vsel %vm370_vm3, %v372_v41, %v369_v40  ;;  %v376_v43 = vstv %s538_s13  ;;  %s544_s18 = sld [smem:[#allocation6 + $0x5a]]  ;;  %vm434_vm3 = vcmp.eq.s32.totalorder %v639_v0, 99 }
  0x77   :  { %v377_v44 = vsel %vm374_vm4, %v376_v43, %v373_v42  ;;  %v380_v45 = vstv %s539_s14  ;;  %s545_s19 = sld [smem:[#allocation6 + $0x5b]] }
  0x78   :  { %v381_v46 = vsel %vm378_vm5, %v380_v45, %v377_v44  ;;  %v384_v47 = vstv %s540_s15  ;;  %s546_s20 = sld [smem:[#allocation6 + $0x5c]] }
  0x79   :  { %v385_v48 = vsel %vm382_vm6, %v384_v47, %v381_v46  ;;  %v388_v49 = vstv %s541_s16  ;;  %s547_s0 = sld [smem:[#allocation6 + $0x5d]] }
  0x7a   :  { %v389_v50 = vsel %vm386_vm7, %v388_v49, %v385_v48  ;;  %v392_v51 = vstv %s542_s17  ;;  %s548_s21 = sld [smem:[#allocation6 + $0x5e]] }
  0x7b   :  { %v393_v52 = vsel %vm390_vm8, %v392_v51, %v389_v50  ;;  %v396_v53 = vstv %s543_s1  ;;  %s549_s22 = sld [smem:[#allocation6 + $0x5f]] }
  0x7c   :  { %v397_v54 = vsel %vm394_vm9, %v396_v53, %v393_v52  ;;  %v400_v55 = vstv %s544_s18  ;;  %s550_s23 = sld [smem:[#allocation6 + $0x60]] }
  0x7d   :  { %v401_v56 = vsel %vm398_vm10, %v400_v55, %v397_v54  ;;  %v404_v57 = vstv %s545_s19  ;;  %s551_s24 = sld [smem:[#allocation6 + $0x61]] }
  0x7e   :  { %v405_v58 = vsel %vm402_vm11, %v404_v57, %v401_v56  ;;  %v408_v59 = vstv %s546_s20  ;;  %s552_s25 = sld [smem:[#allocation6 + $0x62]] }
  0x7f   :  { %v409_v60 = vsel %vm406_vm12, %v408_v59, %v405_v58  ;;  %v412_v61 = vstv %s547_s0  ;;  %s553_s26 = sld [smem:[#allocation6 + $0x63]] }
  0x80   :  { %v413_v62 = vsel %vm410_vm13, %v412_v61, %v409_v60  ;;  %v416_v63 = vstv %s548_s21 }
  0x81   :  { %v417_v1 = vsel %vm414_vm14, %v416_v63, %v413_v62  ;;  %v420_v2 = vstv %s549_s22 }
  0x82   :  { %v421_v3 = vsel %vm418_vm15, %v420_v2, %v417_v1  ;;  %v424_v4 = vstv %s550_s23 }
  0x83   :  { %v425_v5 = vsel %vm422_vm0, %v424_v4, %v421_v3  ;;  %v428_v6 = vstv %s551_s24 }
  0x84   :  { %v429_v7 = vsel %vm426_vm1, %v428_v6, %v425_v5  ;;  %v432_v8 = vstv %s552_s25 }
  0x85   :  { %v433_v9 = vsel %vm430_vm2, %v432_v8, %v429_v7  ;;  %v436_v10 = vstv %s553_s26 }
  0x86   :  { %v437_v11 = vsel %vm434_vm3, %v436_v10, %v433_v9 }
  0x87   :  { %438 = vst [vmem:[#allocation7] sm:$0xff] %v437_v11 }
  0x88   :  { %600 = shalt.err (!%p597_p0)
}
  0x89   :  { %448 = dma.vmem_to_hbm [thread:$0]  %s446_s28, 128, %s746_s2, [#allocation4]  }
  0x8a   :  { %613 = dma.done.wait [#allocation4], 128  }
  0x8b   :  { %614 = vsyncadd [#allocation4], 4294967168 }
  0x8c   :  { %452 = vsyncpa [#allocation3], 1 }
  0x8d   :  { %453 = vsyncpa [#allocation4], 1 }
  0x8e   :  { %454 = vsyncpa [#allocation5], 1 }

</bundles_post_ra>
